<compile_context>
chip_gen: v5e
topology: v5e:2x2
jax: 0.10.0
libtpu: 0.0.40
codegen_flags: <defaults>
</compile_context>

<pallas_src>
import jax
import jax.numpy as jnp
from jax import lax
from jax.experimental import pallas as pl
from jax.experimental.pallas import tpu as pltpu

# ---- small synthetic config (consistent with the module's forward) ----------
B, S, H = 2, 8, 32          # batch, seq-len, hidden_size
NUM_HEADS, DH = 2, 16       # heads, head dim (NUM_HEADS * DH == H)
FF = 64                     # feed-forward inner dim
V = 100                     # vocab size
C = 7                       # num_classes
DR_RATE = 0.5               # module requires truthy dr_rate; eval-mode dropout == identity
LANE = 128                  # TPU lane width

# Column offsets of each weight block inside the packed [H, 5*LANE] slab.
# Each block starts on a 128-lane tile boundary.
C_QKV = 0 * LANE            # [H, 3H]  = cols 0:96   (q 0:32 | k 32:64 | v 64:96)
C_WO = 1 * LANE             # [H, H]   = cols 128:160
C_WF1 = 2 * LANE            # [H, FF]  = cols 256:320
C_WP = 3 * LANE             # [H, H]   = cols 384:416
C_WC = 4 * LANE             # [H, 128] = cols 512:640 (classifier, zero-padded past C)

# Row indices inside the packed [16, 128] f32 bias / layer-norm slab.
R_LN0G, R_LN0B, R_LN1G, R_LN1B, R_LN2G, R_LN2B = 0, 1, 2, 3, 4, 5
R_BQKV, R_BO, R_BF1, R_BF2, R_BP, R_BC = 6, 7, 8, 9, 10, 11
BIAS_ROWS = 16


# ---------------------------- in-kernel helpers ------------------------------
def _layer_norm(x, g, b, eps=1e-12):
    mu = jnp.mean(x, axis=-1, keepdims=True)
    var = jnp.mean(jnp.square(x - mu), axis=-1, keepdims=True)
    return (x - mu) * lax.rsqrt(var + eps) * g + b


def _gelu(x):
    # tanh approximation; reference nn.GELU (erf) differs at ~1e-3 level.
    c = 0.7978845608028654  # sqrt(2/pi)
    return 0.5 * x * (1.0 + jnp.tanh(c * (x + 0.044715 * x * x * x)))


def _softmax(s):
    m = jnp.max(s, axis=-1, keepdims=True)
    e = jnp.exp(s - m)
    # reciprocal-multiply instead of divide: EUP slot instead of VALU divide.
    return e * pl.reciprocal(jnp.sum(e, axis=-1, keepdims=True), approx=True)


# ----------------------- fused BERT + pooler + classifier --------------------
def fused_bert_kernel(vl_ref, x_ref, w1_ref, wf2_ref, b_ref, out_ref):
    # vl_ref : SMEM [B] int32 (scalar prefetch)        valid lengths
    # x_ref  : VMEM [B*S, H] f32                        embeddings (flattened batch)
    # w1_ref : VMEM [H, 5*128] bf16                     packed Wqkv|Wo|Wf1|Wp|Wc
    # wf2_ref: VMEM [FF, H] bf16
    # b_ref  : VMEM [16, 128] f32                       packed LN gammas/betas + biases
    # out_ref: VMEM [B, 128] f32                        padded logits

    def bias(row, width):
        return b_ref[row:row + 1, 0:width]              # [1, width] f32

    xf = x_ref[...]                                     # [B*S, H] f32

    # embedding LayerNorm
    x0 = _layer_norm(xf, bias(R_LN0G, H), bias(R_LN0B, H))

    # fused Q/K/V projection (1/sqrt(DH) already folded into Wq and bq)
    qkv = jnp.dot(x0.astype(jnp.bfloat16), w1_ref[:, C_QKV:C_QKV + 3 * H],
                  preferred_element_type=jnp.float32) + bias(R_BQKV, 3 * H)  # [B*S, 3H]

    col = lax.broadcasted_iota(jnp.int32, (1, S), 1)    # key positions

    ctx_rows = []
    for b in range(B):                                  # static unroll (B=2)
        # additive key mask for this batch element (== gen_attention_mask)
        neg = jnp.where(col < vl_ref[b], 0.0, -1e9)     # [1, S]
        r0 = b * S
        heads = []
        for h in range(NUM_HEADS):                      # static unroll (2 heads)
            q = qkv[r0:r0 + S, h * DH:(h + 1) * DH]                 # [S, DH]
            k = qkv[r0:r0 + S, H + h * DH:H + (h + 1) * DH]         # [S, DH]
            v = qkv[r0:r0 + S, 2 * H + h * DH:2 * H + (h + 1) * DH]  # [S, DH]
            s = jnp.dot(q, k.T, preferred_element_type=jnp.float32) + neg  # [S, S]
            p = _softmax(s)
            heads.append(jnp.dot(p, v, preferred_element_type=jnp.float32))  # [S, DH]
        ctx_rows.append(jnp.concatenate(heads, axis=-1))            # [S, H]
    ctx = jnp.concatenate(ctx_rows, axis=0)                         # [B*S, H]

    # output projection + residual + LN
    attn = jnp.dot(ctx.astype(jnp.bfloat16), w1_ref[:, C_WO:C_WO + H],
                   preferred_element_type=jnp.float32) + bias(R_BO, H)
    h1 = _layer_norm(x0 + attn, bias(R_LN1G, H), bias(R_LN1B, H))

    # feed-forward + residual + LN
    ff = _gelu(jnp.dot(h1.astype(jnp.bfloat16), w1_ref[:, C_WF1:C_WF1 + FF],
                       preferred_element_type=jnp.float32) + bias(R_BF1, FF))
    ff2 = jnp.dot(ff.astype(jnp.bfloat16), wf2_ref[...],
                  preferred_element_type=jnp.float32) + bias(R_BF2, H)
    h2 = _layer_norm(h1 + ff2, bias(R_LN2G, H), bias(R_LN2B, H))

    # pooler: tanh(W_p @ h_[CLS])
    cls = jnp.concatenate([h2[b * S:b * S + 1, :] for b in range(B)], axis=0)  # [B, H]
    pooled = jnp.tanh(jnp.dot(cls.astype(jnp.bfloat16), w1_ref[:, C_WP:C_WP + H],
                              preferred_element_type=jnp.float32) + bias(R_BP, H))

    # dropout: nn.Dropout(p=DR_RATE) is identity at inference.
    # TODO(synk): train-mode dropout via pltpu.prng_seed/prng_random_bits not emitted.

    # classifier Linear(H -> C), lane-padded to 128 output lanes
    logits = jnp.dot(pooled.astype(jnp.bfloat16), w1_ref[:, C_WC:C_WC + LANE],
                     preferred_element_type=jnp.float32) + bias(R_BC, LANE)    # [B, 128]
    out_ref[...] = logits


# ------------------------------ parameters -----------------------------------
def init_params(key):
    ks = jax.random.split(key, 12)

    def w(k, shape, scale=0.02):
        return (scale * jax.random.normal(k, shape)).astype(jnp.float32)

    zeros = lambda n: jnp.zeros((n,), jnp.float32)
    ones = lambda n: jnp.ones((n,), jnp.float32)
    return dict(
        word_emb=w(ks[0], (V, H)),
        type_emb=w(ks[1], (2, H)),
        pos_emb=w(ks[2], (S, H)),
        ln0_g=ones(H), ln0_b=zeros(H),
        wq=w(ks[3], (H, H)), bq=zeros(H),      # head h occupies cols h*DH:(h+1)*DH
        wk=w(ks[4], (H, H)), bk=zeros(H),
        wv=w(ks[5], (H, H)), bv=zeros(H),
        wo=w(ks[6], (H, H)), bo=zeros(H),
        ln1_g=ones(H), ln1_b=zeros(H),
        wf1=w(ks[7], (H, FF)), bf1=zeros(FF),
        wf2=w(ks[8], (FF, H)), bf2=zeros(H),
        ln2_g=ones(H), ln2_b=zeros(H),
        wp=w(ks[9], (H, H)), bp=zeros(H),
        wc=w(ks[10], (H, C)), bc=zeros(C),
    )


def pack_params(p):
    """Pack weights into lane-tile-aligned slabs (host-side, one-time)."""
    scale = 1.0 / (DH ** 0.5)

    def pad_cols(m, cols=LANE):
        return jnp.pad(m, ((0, 0), (0, cols - m.shape[1])))

    w_qkv = jnp.concatenate([p["wq"] * scale, p["wk"], p["wv"]], axis=1)  # [H, 3H]
    w_slab = jnp.concatenate([
        pad_cols(w_qkv),                 # tile 0: QKV
        pad_cols(p["wo"]),               # tile 1: Wo
        pad_cols(p["wf1"]),              # tile 2: Wf1
        pad_cols(p["wp"]),               # tile 3: Wp (pooler)
        pad_cols(p["wc"]),               # tile 4: Wc (classifier, padded past C)
    ], axis=1).astype(jnp.bfloat16)                                       # [H, 640]

    wf2 = p["wf2"].astype(jnp.bfloat16)                                   # [FF, H]

    def row(v):
        return jnp.pad(v, (0, LANE - v.shape[0]))

    b_qkv = jnp.concatenate([p["bq"] * scale, p["bk"], p["bv"]])          # [3H]
    rows = [row(p["ln0_g"]), row(p["ln0_b"]), row(p["ln1_g"]), row(p["ln1_b"]),
            row(p["ln2_g"]), row(p["ln2_b"]), row(b_qkv), row(p["bo"]),
            row(p["bf1"]), row(p["bf2"]), row(p["bp"]), row(p["bc"])]
    rows += [jnp.zeros((LANE,), jnp.float32)] * (BIAS_ROWS - len(rows))
    bias_slab = jnp.stack(rows, axis=0)                                   # [16, 128]
    return w_slab, wf2, bias_slab


# ------------------------------ forward (== BERTClassifier.forward) ----------
def bert_classifier_forward(token_ids, valid_length, segment_ids, params):
    w_slab, wf2, bias_slab = pack_params(params)

    # embeddings (gathers done host-side; everything else is one fused kernel)
    x = (jnp.take(params["word_emb"], token_ids, axis=0)
         + jnp.take(params["type_emb"], segment_ids, axis=0)
         + params["pos_emb"][None, :, :]).astype(jnp.float32)             # [B, S, H]
    xf = x.reshape(B * S, H)

    logits_pad = pl.pallas_call(
        fused_bert_kernel,
        out_shape=jax.ShapeDtypeStruct((B, LANE), jnp.float32),
        grid_spec=pltpu.PrefetchScalarGridSpec(
            num_scalar_prefetch=1,                      # valid_length -> SMEM
            grid=(1,),                                  # whole batch in one step
            in_specs=[
                pl.BlockSpec((B * S, H), lambda i, vl: (0, 0)),      # activations
                pl.BlockSpec((H, 5 * LANE), lambda i, vl: (0, 0)),   # packed weights
                pl.BlockSpec((FF, H), lambda i, vl: (0, 0)),         # Wf2
                pl.BlockSpec((BIAS_ROWS, LANE), lambda i, vl: (0, 0)),  # biases/LN
            ],
            out_specs=pl.BlockSpec((B, LANE), lambda i, vl: (0, 0)),
        ),
        compiler_params=pltpu.CompilerParams(dimension_semantics=("arbitrary",)),
    )(valid_length.astype(jnp.int32), xf, w_slab, wf2, bias_slab)

    return logits_pad[:, :C]                                              # [B, C]


# ------------------------------------ main ------------------------------------
if __name__ == "__main__":
    key = jax.random.PRNGKey(0)
    pkey, tkey, skey = jax.random.split(key, 3)
    params = init_params(pkey)

    token_ids = jax.random.randint(tkey, (B, S), 0, V, dtype=jnp.int32)
    segment_ids = jax.random.randint(skey, (B, S), 0, 2, dtype=jnp.int32)
    valid_length = jnp.array([5, 8], dtype=jnp.int32)

    logits = bert_classifier_forward(token_ids, valid_length, segment_ids, params)
    jax.block_until_ready(logits)
    assert logits.shape == (B, C) and logits.dtype == jnp.float32
    assert bool(jnp.all(jnp.isfinite(logits)))
    print("KERNEL_OK")
</pallas_src>

<mosaic_0001>
module attributes {stable_mosaic.version = 11 : i64} {
  func.func @fused_bert_kernel(%arg0: i32, %arg1: memref<2xi32, #tpu.memory_space<smem>>, %arg2: memref<16x32xf32, #tpu.memory_space<vmem>>, %arg3: memref<32x640xbf16, #tpu.memory_space<vmem>>, %arg4: memref<64x32xbf16, #tpu.memory_space<vmem>>, %arg5: memref<16x128xf32, #tpu.memory_space<vmem>>, %arg6: memref<2x128xf32, #tpu.memory_space<vmem>>) attributes {dimension_semantics = [#tpu.dimension_semantics<arbitrary>], iteration_bounds = array<i64: 1>, scalar_prefetch = 1 : i64, scratch_operands = 0 : i64, tpu.core_type = #tpu.core_type<tc>, window_params = [{pipeline_mode = #tpu.pipeline_mode<synchronous>, transform_indices = @transform_0, window_bounds = array<i64: 16, 32>}, {pipeline_mode = #tpu.pipeline_mode<synchronous>, transform_indices = @transform_1, window_bounds = array<i64: 32, 640>}, {pipeline_mode = #tpu.pipeline_mode<synchronous>, transform_indices = @transform_2, window_bounds = array<i64: 64, 32>}, {pipeline_mode = #tpu.pipeline_mode<synchronous>, transform_indices = @transform_3, window_bounds = array<i64: 16, 128>}, {pipeline_mode = #tpu.pipeline_mode<synchronous>, transform_indices = @transform_4, window_bounds = array<i64: 2, 128>}]} {
    %c0 = arith.constant 0 : index
    %c0_0 = arith.constant 0 : index
    %0 = vector.load %arg2[%c0, %c0_0] : memref<16x32xf32, #tpu.memory_space<vmem>>, vector<16x32xf32>
    %c0_1 = arith.constant 0 : index
    %c0_2 = arith.constant 0 : index
    %1 = vector.load %arg5[%c0_1, %c0_2] : memref<16x128xf32, #tpu.memory_space<vmem>>, vector<1x32xf32>
    %c1 = arith.constant 1 : index
    %c0_3 = arith.constant 0 : index
    %2 = vector.load %arg5[%c1, %c0_3] : memref<16x128xf32, #tpu.memory_space<vmem>>, vector<1x32xf32>
    %cst = arith.constant dense<0.000000e+00> : vector<16xf32>
    %3 = vector.multi_reduction <add>, %0, %cst [1] : vector<16x32xf32> to vector<16xf32>
    %4 = vector.shape_cast %3 : vector<16xf32> to vector<16x1xf32>
    %cst_4 = arith.constant 3.200000e+01 : f32
    %5 = vector.broadcast %cst_4 : f32 to vector<16x1xf32>
    %6 = arith.divf %4, %5 : vector<16x1xf32>
    %7 = vector.broadcast %6 : vector<16x1xf32> to vector<16x32xf32>
    %8 = arith.subf %0, %7 : vector<16x32xf32>
    %9 = arith.mulf %8, %8 : vector<16x32xf32>
    %cst_5 = arith.constant dense<0.000000e+00> : vector<16xf32>
    %10 = vector.multi_reduction <add>, %9, %cst_5 [1] : vector<16x32xf32> to vector<16xf32>
    %11 = vector.shape_cast %10 : vector<16xf32> to vector<16x1xf32>
    %cst_6 = arith.constant 3.200000e+01 : f32
    %12 = vector.broadcast %cst_6 : f32 to vector<16x1xf32>
    %13 = arith.divf %11, %12 : vector<16x1xf32>
    %14 = vector.broadcast %6 : vector<16x1xf32> to vector<16x32xf32>
    %15 = arith.subf %0, %14 : vector<16x32xf32>
    %cst_7 = arith.constant 9.99999996E-13 : f32
    %16 = vector.broadcast %cst_7 : f32 to vector<16x1xf32>
    %17 = arith.addf %13, %16 : vector<16x1xf32>
    %18 = math.rsqrt %17 : vector<16x1xf32>
    %19 = vector.broadcast %18 : vector<16x1xf32> to vector<16x32xf32>
    %20 = arith.mulf %15, %19 : vector<16x32xf32>
    %21 = vector.broadcast %1 : vector<1x32xf32> to vector<16x32xf32>
    %22 = arith.mulf %20, %21 : vector<16x32xf32>
    %23 = vector.broadcast %2 : vector<1x32xf32> to vector<16x32xf32>
    %24 = arith.addf %22, %23 : vector<16x32xf32>
    %25 = arith.truncf %24 : vector<16x32xf32> to vector<16x32xbf16>
    %c0_8 = arith.constant 0 : index
    %c0_9 = arith.constant 0 : index
    %26 = vector.load %arg3[%c0_8, %c0_9] : memref<32x640xbf16, #tpu.memory_space<vmem>>, vector<32x96xbf16>
    %cst_10 = arith.constant dense<0.000000e+00> : vector<16x96xf32>
    %27 = tpu.matmul %25, %26, %cst_10 {dimension_numbers = #tpu.dot_dimension_numbers<[1], [0], [0], [1], [0, 0, 1, 1], [], []>} : vector<16x32xbf16>, vector<32x96xbf16>, vector<16x96xf32> -> vector<16x96xf32>
    %c6 = arith.constant 6 : index
    %c0_11 = arith.constant 0 : index
    %28 = vector.load %arg5[%c6, %c0_11] : memref<16x128xf32, #tpu.memory_space<vmem>>, vector<1x96xf32>
    %29 = vector.broadcast %28 : vector<1x96xf32> to vector<16x96xf32>
    %30 = arith.addf %27, %29 : vector<16x96xf32>
    %31 = tpu.iota {dimensions = array<i32: 1>} : vector<1x8xi32>
    %c0_12 = arith.constant 0 : index
    %32 = memref.load %arg1[%c0_12] : memref<2xi32, #tpu.memory_space<smem>>
    %33 = vector.broadcast %32 : i32 to vector<1x8xi32>
    %34 = arith.cmpi slt, %31, %33 : vector<1x8xi32>
    %cst_13 = arith.constant 0.000000e+00 : f32
    %cst_14 = arith.constant -1.000000e+09 : f32
    %35 = vector.broadcast %cst_13 : f32 to vector<1x8xf32>
    %36 = vector.broadcast %cst_14 : f32 to vector<1x8xf32>
    %37 = arith.select %34, %35, %36 : vector<1x8xi1>, vector<1x8xf32>
    %38 = vector.extract_strided_slice %30 {offsets = [0, 0], sizes = [8, 16], strides = [1, 1]} : vector<16x96xf32> to vector<8x16xf32>
    %39 = vector.extract_strided_slice %30 {offsets = [0, 32], sizes = [8, 16], strides = [1, 1]} : vector<16x96xf32> to vector<8x16xf32>
    %40 = vector.extract_strided_slice %30 {offsets = [0, 64], sizes = [8, 16], strides = [1, 1]} : vector<16x96xf32> to vector<8x16xf32>
    %41 = tpu.transpose %39, [1, 0] : vector<8x16xf32> -> vector<16x8xf32>
    %cst_15 = arith.constant dense<0.000000e+00> : vector<8x8xf32>
    %42 = tpu.matmul %38, %41, %cst_15 {dimension_numbers = #tpu.dot_dimension_numbers<[1], [0], [0], [1], [0, 0, 1, 1], [], []>} : vector<8x16xf32>, vector<16x8xf32>, vector<8x8xf32> -> vector<8x8xf32>
    %43 = vector.broadcast %37 : vector<1x8xf32> to vector<8x8xf32>
    %44 = arith.addf %42, %43 : vector<8x8xf32>
    %cst_16 = arith.constant dense<0xFF800000> : vector<8xf32>
    %45 = vector.multi_reduction <maximumf>, %44, %cst_16 [1] : vector<8x8xf32> to vector<8xf32>
    %46 = vector.shape_cast %45 : vector<8xf32> to vector<8x1xf32>
    %47 = vector.broadcast %46 : vector<8x1xf32> to vector<8x8xf32>
    %48 = arith.subf %44, %47 : vector<8x8xf32>
    %49 = math.exp %48 : vector<8x8xf32>
    %cst_17 = arith.constant dense<0.000000e+00> : vector<8xf32>
    %50 = vector.multi_reduction <add>, %49, %cst_17 [1] : vector<8x8xf32> to vector<8xf32>
    %51 = vector.shape_cast %50 : vector<8xf32> to vector<8x1xf32>
    %52 = tpu.reciprocal %51 {approx = true} : vector<8x1xf32> -> vector<8x1xf32>
    %53 = vector.broadcast %52 : vector<8x1xf32> to vector<8x8xf32>
    %54 = arith.mulf %49, %53 : vector<8x8xf32>
    %cst_18 = arith.constant dense<0.000000e+00> : vector<8x16xf32>
    %55 = tpu.matmul %54, %40, %cst_18 {dimension_numbers = #tpu.dot_dimension_numbers<[1], [0], [0], [1], [0, 0, 1, 1], [], []>} : vector<8x8xf32>, vector<8x16xf32>, vector<8x16xf32> -> vector<8x16xf32>
    %56 = vector.extract_strided_slice %30 {offsets = [0, 16], sizes = [8, 16], strides = [1, 1]} : vector<16x96xf32> to vector<8x16xf32>
    %57 = vector.extract_strided_slice %30 {offsets = [0, 48], sizes = [8, 16], strides = [1, 1]} : vector<16x96xf32> to vector<8x16xf32>
    %58 = vector.extract_strided_slice %30 {offsets = [0, 80], sizes = [8, 16], strides = [1, 1]} : vector<16x96xf32> to vector<8x16xf32>
    %59 = tpu.transpose %57, [1, 0] : vector<8x16xf32> -> vector<16x8xf32>
    %cst_19 = arith.constant dense<0.000000e+00> : vector<8x8xf32>
    %60 = tpu.matmul %56, %59, %cst_19 {dimension_numbers = #tpu.dot_dimension_numbers<[1], [0], [0], [1], [0, 0, 1, 1], [], []>} : vector<8x16xf32>, vector<16x8xf32>, vector<8x8xf32> -> vector<8x8xf32>
    %61 = vector.broadcast %37 : vector<1x8xf32> to vector<8x8xf32>
    %62 = arith.addf %60, %61 : vector<8x8xf32>
    %cst_20 = arith.constant dense<0xFF800000> : vector<8xf32>
    %63 = vector.multi_reduction <maximumf>, %62, %cst_20 [1] : vector<8x8xf32> to vector<8xf32>
    %64 = vector.shape_cast %63 : vector<8xf32> to vector<8x1xf32>
    %65 = vector.broadcast %64 : vector<8x1xf32> to vector<8x8xf32>
    %66 = arith.subf %62, %65 : vector<8x8xf32>
    %67 = math.exp %66 : vector<8x8xf32>
    %cst_21 = arith.constant dense<0.000000e+00> : vector<8xf32>
    %68 = vector.multi_reduction <add>, %67, %cst_21 [1] : vector<8x8xf32> to vector<8xf32>
    %69 = vector.shape_cast %68 : vector<8xf32> to vector<8x1xf32>
    %70 = tpu.reciprocal %69 {approx = true} : vector<8x1xf32> -> vector<8x1xf32>
    %71 = vector.broadcast %70 : vector<8x1xf32> to vector<8x8xf32>
    %72 = arith.mulf %67, %71 : vector<8x8xf32>
    %cst_22 = arith.constant dense<0.000000e+00> : vector<8x16xf32>
    %73 = tpu.matmul %72, %58, %cst_22 {dimension_numbers = #tpu.dot_dimension_numbers<[1], [0], [0], [1], [0, 0, 1, 1], [], []>} : vector<8x8xf32>, vector<8x16xf32>, vector<8x16xf32> -> vector<8x16xf32>
    %74 = tpu.concatenate %55, %73 in 1 : vector<8x16xf32>, vector<8x16xf32> -> vector<8x32xf32>
    %c1_23 = arith.constant 1 : index
    %75 = memref.load %arg1[%c1_23] : memref<2xi32, #tpu.memory_space<smem>>
    %76 = vector.broadcast %75 : i32 to vector<1x8xi32>
    %77 = arith.cmpi slt, %31, %76 : vector<1x8xi32>
    %cst_24 = arith.constant 0.000000e+00 : f32
    %cst_25 = arith.constant -1.000000e+09 : f32
    %78 = vector.broadcast %cst_24 : f32 to vector<1x8xf32>
    %79 = vector.broadcast %cst_25 : f32 to vector<1x8xf32>
    %80 = arith.select %77, %78, %79 : vector<1x8xi1>, vector<1x8xf32>
    %81 = vector.extract_strided_slice %30 {offsets = [8, 0], sizes = [8, 16], strides = [1, 1]} : vector<16x96xf32> to vector<8x16xf32>
    %82 = vector.extract_strided_slice %30 {offsets = [8, 32], sizes = [8, 16], strides = [1, 1]} : vector<16x96xf32> to vector<8x16xf32>
    %83 = vector.extract_strided_slice %30 {offsets = [8, 64], sizes = [8, 16], strides = [1, 1]} : vector<16x96xf32> to vector<8x16xf32>
    %84 = tpu.transpose %82, [1, 0] : vector<8x16xf32> -> vector<16x8xf32>
    %cst_26 = arith.constant dense<0.000000e+00> : vector<8x8xf32>
    %85 = tpu.matmul %81, %84, %cst_26 {dimension_numbers = #tpu.dot_dimension_numbers<[1], [0], [0], [1], [0, 0, 1, 1], [], []>} : vector<8x16xf32>, vector<16x8xf32>, vector<8x8xf32> -> vector<8x8xf32>
    %86 = vector.broadcast %80 : vector<1x8xf32> to vector<8x8xf32>
    %87 = arith.addf %85, %86 : vector<8x8xf32>
    %cst_27 = arith.constant dense<0xFF800000> : vector<8xf32>
    %88 = vector.multi_reduction <maximumf>, %87, %cst_27 [1] : vector<8x8xf32> to vector<8xf32>
    %89 = vector.shape_cast %88 : vector<8xf32> to vector<8x1xf32>
    %90 = vector.broadcast %89 : vector<8x1xf32> to vector<8x8xf32>
    %91 = arith.subf %87, %90 : vector<8x8xf32>
    %92 = math.exp %91 : vector<8x8xf32>
    %cst_28 = arith.constant dense<0.000000e+00> : vector<8xf32>
    %93 = vector.multi_reduction <add>, %92, %cst_28 [1] : vector<8x8xf32> to vector<8xf32>
    %94 = vector.shape_cast %93 : vector<8xf32> to vector<8x1xf32>
    %95 = tpu.reciprocal %94 {approx = true} : vector<8x1xf32> -> vector<8x1xf32>
    %96 = vector.broadcast %95 : vector<8x1xf32> to vector<8x8xf32>
    %97 = arith.mulf %92, %96 : vector<8x8xf32>
    %cst_29 = arith.constant dense<0.000000e+00> : vector<8x16xf32>
    %98 = tpu.matmul %97, %83, %cst_29 {dimension_numbers = #tpu.dot_dimension_numbers<[1], [0], [0], [1], [0, 0, 1, 1], [], []>} : vector<8x8xf32>, vector<8x16xf32>, vector<8x16xf32> -> vector<8x16xf32>
    %99 = vector.extract_strided_slice %30 {offsets = [8, 16], sizes = [8, 16], strides = [1, 1]} : vector<16x96xf32> to vector<8x16xf32>
    %100 = vector.extract_strided_slice %30 {offsets = [8, 48], sizes = [8, 16], strides = [1, 1]} : vector<16x96xf32> to vector<8x16xf32>
    %101 = vector.extract_strided_slice %30 {offsets = [8, 80], sizes = [8, 16], strides = [1, 1]} : vector<16x96xf32> to vector<8x16xf32>
    %102 = tpu.transpose %100, [1, 0] : vector<8x16xf32> -> vector<16x8xf32>
    %cst_30 = arith.constant dense<0.000000e+00> : vector<8x8xf32>
    %103 = tpu.matmul %99, %102, %cst_30 {dimension_numbers = #tpu.dot_dimension_numbers<[1], [0], [0], [1], [0, 0, 1, 1], [], []>} : vector<8x16xf32>, vector<16x8xf32>, vector<8x8xf32> -> vector<8x8xf32>
    %104 = vector.broadcast %80 : vector<1x8xf32> to vector<8x8xf32>
    %105 = arith.addf %103, %104 : vector<8x8xf32>
    %cst_31 = arith.constant dense<0xFF800000> : vector<8xf32>
    %106 = vector.multi_reduction <maximumf>, %105, %cst_31 [1] : vector<8x8xf32> to vector<8xf32>
    %107 = vector.shape_cast %106 : vector<8xf32> to vector<8x1xf32>
    %108 = vector.broadcast %107 : vector<8x1xf32> to vector<8x8xf32>
    %109 = arith.subf %105, %108 : vector<8x8xf32>
    %110 = math.exp %109 : vector<8x8xf32>
    %cst_32 = arith.constant dense<0.000000e+00> : vector<8xf32>
    %111 = vector.multi_reduction <add>, %110, %cst_32 [1] : vector<8x8xf32> to vector<8xf32>
    %112 = vector.shape_cast %111 : vector<8xf32> to vector<8x1xf32>
    %113 = tpu.reciprocal %112 {approx = true} : vector<8x1xf32> -> vector<8x1xf32>
    %114 = vector.broadcast %113 : vector<8x1xf32> to vector<8x8xf32>
    %115 = arith.mulf %110, %114 : vector<8x8xf32>
    %cst_33 = arith.constant dense<0.000000e+00> : vector<8x16xf32>
    %116 = tpu.matmul %115, %101, %cst_33 {dimension_numbers = #tpu.dot_dimension_numbers<[1], [0], [0], [1], [0, 0, 1, 1], [], []>} : vector<8x8xf32>, vector<8x16xf32>, vector<8x16xf32> -> vector<8x16xf32>
    %117 = tpu.concatenate %98, %116 in 1 : vector<8x16xf32>, vector<8x16xf32> -> vector<8x32xf32>
    %118 = tpu.concatenate %74, %117 in 0 : vector<8x32xf32>, vector<8x32xf32> -> vector<16x32xf32>
    %119 = arith.truncf %118 : vector<16x32xf32> to vector<16x32xbf16>
    %c0_34 = arith.constant 0 : index
    %c128 = arith.constant 128 : index
    %120 = vector.load %arg3[%c0_34, %c128] : memref<32x640xbf16, #tpu.memory_space<vmem>>, vector<32x32xbf16>
    %cst_35 = arith.constant dense<0.000000e+00> : vector<16x32xf32>
    %121 = tpu.matmul %119, %120, %cst_35 {dimension_numbers = #tpu.dot_dimension_numbers<[1], [0], [0], [1], [0, 0, 1, 1], [], []>} : vector<16x32xbf16>, vector<32x32xbf16>, vector<16x32xf32> -> vector<16x32xf32>
    %c7 = arith.constant 7 : index
    %c0_36 = arith.constant 0 : index
    %122 = vector.load %arg5[%c7, %c0_36] : memref<16x128xf32, #tpu.memory_space<vmem>>, vector<1x32xf32>
    %123 = vector.broadcast %122 : vector<1x32xf32> to vector<16x32xf32>
    %124 = arith.addf %121, %123 : vector<16x32xf32>
    %125 = arith.addf %24, %124 : vector<16x32xf32>
    %c2 = arith.constant 2 : index
    %c0_37 = arith.constant 0 : index
    %126 = vector.load %arg5[%c2, %c0_37] : memref<16x128xf32, #tpu.memory_space<vmem>>, vector<1x32xf32>
    %c3 = arith.constant 3 : index
    %c0_38 = arith.constant 0 : index
    %127 = vector.load %arg5[%c3, %c0_38] : memref<16x128xf32, #tpu.memory_space<vmem>>, vector<1x32xf32>
    %cst_39 = arith.constant dense<0.000000e+00> : vector<16xf32>
    %128 = vector.multi_reduction <add>, %125, %cst_39 [1] : vector<16x32xf32> to vector<16xf32>
    %129 = vector.shape_cast %128 : vector<16xf32> to vector<16x1xf32>
    %cst_40 = arith.constant 3.200000e+01 : f32
    %130 = vector.broadcast %cst_40 : f32 to vector<16x1xf32>
    %131 = arith.divf %129, %130 : vector<16x1xf32>
    %132 = vector.broadcast %131 : vector<16x1xf32> to vector<16x32xf32>
    %133 = arith.subf %125, %132 : vector<16x32xf32>
    %134 = arith.mulf %133, %133 : vector<16x32xf32>
    %cst_41 = arith.constant dense<0.000000e+00> : vector<16xf32>
    %135 = vector.multi_reduction <add>, %134, %cst_41 [1] : vector<16x32xf32> to vector<16xf32>
    %136 = vector.shape_cast %135 : vector<16xf32> to vector<16x1xf32>
    %cst_42 = arith.constant 3.200000e+01 : f32
    %137 = vector.broadcast %cst_42 : f32 to vector<16x1xf32>
    %138 = arith.divf %136, %137 : vector<16x1xf32>
    %139 = vector.broadcast %131 : vector<16x1xf32> to vector<16x32xf32>
    %140 = arith.subf %125, %139 : vector<16x32xf32>
    %cst_43 = arith.constant 9.99999996E-13 : f32
    %141 = vector.broadcast %cst_43 : f32 to vector<16x1xf32>
    %142 = arith.addf %138, %141 : vector<16x1xf32>
    %143 = math.rsqrt %142 : vector<16x1xf32>
    %144 = vector.broadcast %143 : vector<16x1xf32> to vector<16x32xf32>
    %145 = arith.mulf %140, %144 : vector<16x32xf32>
    %146 = vector.broadcast %126 : vector<1x32xf32> to vector<16x32xf32>
    %147 = arith.mulf %145, %146 : vector<16x32xf32>
    %148 = vector.broadcast %127 : vector<1x32xf32> to vector<16x32xf32>
    %149 = arith.addf %147, %148 : vector<16x32xf32>
    %150 = arith.truncf %149 : vector<16x32xf32> to vector<16x32xbf16>
    %c0_44 = arith.constant 0 : index
    %c256 = arith.constant 256 : index
    %151 = vector.load %arg3[%c0_44, %c256] : memref<32x640xbf16, #tpu.memory_space<vmem>>, vector<32x64xbf16>
    %cst_45 = arith.constant dense<0.000000e+00> : vector<16x64xf32>
    %152 = tpu.matmul %150, %151, %cst_45 {dimension_numbers = #tpu.dot_dimension_numbers<[1], [0], [0], [1], [0, 0, 1, 1], [], []>} : vector<16x32xbf16>, vector<32x64xbf16>, vector<16x64xf32> -> vector<16x64xf32>
    %c8 = arith.constant 8 : index
    %c0_46 = arith.constant 0 : index
    %153 = vector.load %arg5[%c8, %c0_46] : memref<16x128xf32, #tpu.memory_space<vmem>>, vector<1x64xf32>
    %154 = vector.broadcast %153 : vector<1x64xf32> to vector<16x64xf32>
    %155 = arith.addf %152, %154 : vector<16x64xf32>
    %cst_47 = arith.constant 5.000000e-01 : f32
    %156 = vector.broadcast %cst_47 : f32 to vector<16x64xf32>
    %157 = arith.mulf %156, %155 : vector<16x64xf32>
    %cst_48 = arith.constant 4.471500e-02 : f32
    %158 = vector.broadcast %cst_48 : f32 to vector<16x64xf32>
    %159 = arith.mulf %158, %155 : vector<16x64xf32>
    %160 = arith.mulf %159, %155 : vector<16x64xf32>
    %161 = arith.mulf %160, %155 : vector<16x64xf32>
    %162 = arith.addf %155, %161 : vector<16x64xf32>
    %cst_49 = arith.constant 0.797884583 : f32
    %163 = vector.broadcast %cst_49 : f32 to vector<16x64xf32>
    %164 = arith.mulf %163, %162 : vector<16x64xf32>
    %165 = math.tanh %164 : vector<16x64xf32>
    %cst_50 = arith.constant 1.000000e+00 : f32
    %166 = vector.broadcast %cst_50 : f32 to vector<16x64xf32>
    %167 = arith.addf %166, %165 : vector<16x64xf32>
    %168 = arith.mulf %157, %167 : vector<16x64xf32>
    %169 = arith.truncf %168 : vector<16x64xf32> to vector<16x64xbf16>
    %c0_51 = arith.constant 0 : index
    %c0_52 = arith.constant 0 : index
    %170 = vector.load %arg4[%c0_51, %c0_52] : memref<64x32xbf16, #tpu.memory_space<vmem>>, vector<64x32xbf16>
    %cst_53 = arith.constant dense<0.000000e+00> : vector<16x32xf32>
    %171 = tpu.matmul %169, %170, %cst_53 {dimension_numbers = #tpu.dot_dimension_numbers<[1], [0], [0], [1], [0, 0, 1, 1], [], []>} : vector<16x64xbf16>, vector<64x32xbf16>, vector<16x32xf32> -> vector<16x32xf32>
    %c9 = arith.constant 9 : index
    %c0_54 = arith.constant 0 : index
    %172 = vector.load %arg5[%c9, %c0_54] : memref<16x128xf32, #tpu.memory_space<vmem>>, vector<1x32xf32>
    %173 = vector.broadcast %172 : vector<1x32xf32> to vector<16x32xf32>
    %174 = arith.addf %171, %173 : vector<16x32xf32>
    %175 = arith.addf %149, %174 : vector<16x32xf32>
    %c4 = arith.constant 4 : index
    %c0_55 = arith.constant 0 : index
    %176 = vector.load %arg5[%c4, %c0_55] : memref<16x128xf32, #tpu.memory_space<vmem>>, vector<1x32xf32>
    %c5 = arith.constant 5 : index
    %c0_56 = arith.constant 0 : index
    %177 = vector.load %arg5[%c5, %c0_56] : memref<16x128xf32, #tpu.memory_space<vmem>>, vector<1x32xf32>
    %cst_57 = arith.constant dense<0.000000e+00> : vector<16xf32>
    %178 = vector.multi_reduction <add>, %175, %cst_57 [1] : vector<16x32xf32> to vector<16xf32>
    %179 = vector.shape_cast %178 : vector<16xf32> to vector<16x1xf32>
    %cst_58 = arith.constant 3.200000e+01 : f32
    %180 = vector.broadcast %cst_58 : f32 to vector<16x1xf32>
    %181 = arith.divf %179, %180 : vector<16x1xf32>
    %182 = vector.broadcast %181 : vector<16x1xf32> to vector<16x32xf32>
    %183 = arith.subf %175, %182 : vector<16x32xf32>
    %184 = arith.mulf %183, %183 : vector<16x32xf32>
    %cst_59 = arith.constant dense<0.000000e+00> : vector<16xf32>
    %185 = vector.multi_reduction <add>, %184, %cst_59 [1] : vector<16x32xf32> to vector<16xf32>
    %186 = vector.shape_cast %185 : vector<16xf32> to vector<16x1xf32>
    %cst_60 = arith.constant 3.200000e+01 : f32
    %187 = vector.broadcast %cst_60 : f32 to vector<16x1xf32>
    %188 = arith.divf %186, %187 : vector<16x1xf32>
    %189 = vector.broadcast %181 : vector<16x1xf32> to vector<16x32xf32>
    %190 = arith.subf %175, %189 : vector<16x32xf32>
    %cst_61 = arith.constant 9.99999996E-13 : f32
    %191 = vector.broadcast %cst_61 : f32 to vector<16x1xf32>
    %192 = arith.addf %188, %191 : vector<16x1xf32>
    %193 = math.rsqrt %192 : vector<16x1xf32>
    %194 = vector.broadcast %193 : vector<16x1xf32> to vector<16x32xf32>
    %195 = arith.mulf %190, %194 : vector<16x32xf32>
    %196 = vector.broadcast %176 : vector<1x32xf32> to vector<16x32xf32>
    %197 = arith.mulf %195, %196 : vector<16x32xf32>
    %198 = vector.broadcast %177 : vector<1x32xf32> to vector<16x32xf32>
    %199 = arith.addf %197, %198 : vector<16x32xf32>
    %200 = vector.extract_strided_slice %199 {offsets = [0, 0], sizes = [1, 32], strides = [1, 1]} : vector<16x32xf32> to vector<1x32xf32>
    %201 = vector.extract_strided_slice %199 {offsets = [8, 0], sizes = [1, 32], strides = [1, 1]} : vector<16x32xf32> to vector<1x32xf32>
    %202 = tpu.concatenate %200, %201 in 0 : vector<1x32xf32>, vector<1x32xf32> -> vector<2x32xf32>
    %203 = arith.truncf %202 : vector<2x32xf32> to vector<2x32xbf16>
    %c0_62 = arith.constant 0 : index
    %c384 = arith.constant 384 : index
    %204 = vector.load %arg3[%c0_62, %c384] : memref<32x640xbf16, #tpu.memory_space<vmem>>, vector<32x32xbf16>
    %cst_63 = arith.constant dense<0.000000e+00> : vector<2x32xf32>
    %205 = tpu.matmul %203, %204, %cst_63 {dimension_numbers = #tpu.dot_dimension_numbers<[1], [0], [0], [1], [0, 0, 1, 1], [], []>} : vector<2x32xbf16>, vector<32x32xbf16>, vector<2x32xf32> -> vector<2x32xf32>
    %c10 = arith.constant 10 : index
    %c0_64 = arith.constant 0 : index
    %206 = vector.load %arg5[%c10, %c0_64] : memref<16x128xf32, #tpu.memory_space<vmem>>, vector<1x32xf32>
    %207 = vector.broadcast %206 : vector<1x32xf32> to vector<2x32xf32>
    %208 = arith.addf %205, %207 : vector<2x32xf32>
    %209 = math.tanh %208 : vector<2x32xf32>
    %210 = arith.truncf %209 : vector<2x32xf32> to vector<2x32xbf16>
    %c0_65 = arith.constant 0 : index
    %c512 = arith.constant 512 : index
    %211 = vector.load %arg3[%c0_65, %c512] : memref<32x640xbf16, #tpu.memory_space<vmem>>, vector<32x128xbf16>
    %cst_66 = arith.constant dense<0.000000e+00> : vector<2x128xf32>
    %212 = tpu.matmul %210, %211, %cst_66 {dimension_numbers = #tpu.dot_dimension_numbers<[1], [0], [0], [1], [0, 0, 1, 1], [], []>} : vector<2x32xbf16>, vector<32x128xbf16>, vector<2x128xf32> -> vector<2x128xf32>
    %c11 = arith.constant 11 : index
    %c0_67 = arith.constant 0 : index
    %213 = vector.load %arg5[%c11, %c0_67] : memref<16x128xf32, #tpu.memory_space<vmem>>, vector<1x128xf32>
    %214 = vector.broadcast %213 : vector<1x128xf32> to vector<2x128xf32>
    %215 = arith.addf %212, %214 : vector<2x128xf32>
    %c0_68 = arith.constant 0 : index
    %c0_69 = arith.constant 0 : index
    %216 = vector.load %arg6[%c0_68, %c0_69] : memref<2x128xf32, #tpu.memory_space<vmem>>, vector<2x128xf32>
    tpu.vector_store %arg6[%c0_68, %c0_69], %215 {strides = array<i32>} : memref<2x128xf32, #tpu.memory_space<vmem>>, vector<2x128xf32>,
    return
  }
  func.func @transform_0(%arg0: i32, %arg1: memref<2xi32, #tpu.memory_space<smem>>) -> (i32, i32) {
    %c0_i32 = arith.constant 0 : i32
    %c0_i32_0 = arith.constant 0 : i32
    %c0_i32_1 = arith.constant 0 : i32
    return %c0_i32, %c0_i32_0 : i32, i32
  }
  func.func @transform_1(%arg0: i32, %arg1: memref<2xi32, #tpu.memory_space<smem>>) -> (i32, i32) {
    %c0_i32 = arith.constant 0 : i32
    %c0_i32_0 = arith.constant 0 : i32
    %c0_i32_1 = arith.constant 0 : i32
    return %c0_i32, %c0_i32_0 : i32, i32
  }
  func.func @transform_2(%arg0: i32, %arg1: memref<2xi32, #tpu.memory_space<smem>>) -> (i32, i32) {
    %c0_i32 = arith.constant 0 : i32
    %c0_i32_0 = arith.constant 0 : i32
    %c0_i32_1 = arith.constant 0 : i32
    return %c0_i32, %c0_i32_0 : i32, i32
  }
  func.func @transform_3(%arg0: i32, %arg1: memref<2xi32, #tpu.memory_space<smem>>) -> (i32, i32) {
    %c0_i32 = arith.constant 0 : i32
    %c0_i32_0 = arith.constant 0 : i32
    %c0_i32_1 = arith.constant 0 : i32
    return %c0_i32, %c0_i32_0 : i32, i32
  }
  func.func @transform_4(%arg0: i32, %arg1: memref<2xi32, #tpu.memory_space<smem>>) -> (i32, i32) {
    %c0_i32 = arith.constant 0 : i32
    %c0_i32_0 = arith.constant 0 : i32
    %c0_i32_1 = arith.constant 0 : i32
    return %c0_i32, %c0_i32_0 : i32, i32
  }
}

</mosaic_0001>

<bundles_post_ra>
// kernel: tpu_custom_call.1
= control target key start
LH: loop header
LB: loop body
LE: loop exit
PB: predicated region body
PF: predicated region fallthrough
CT: control target
= control target key end

     0   :  { %s988_s21 = smov [#allocation3]   ;;  %s1169_s0 = inlined_call_operand.vmem [shape: s32[2], index: 0, kind: input, shape index: {}]   ;;  %s1170_s1 = inlined_call_operand.vmem [shape: f32[16,32], index: 1, kind: input, shape index: {}]   ;;  %s1171_s2 = inlined_call_operand.hbm [shape: bf16[32,640], index: 2, kind: input, shape index: {}]   ;;  %s1172_s3 = inlined_call_operand.vmem [shape: bf16[64,32], index: 3, kind: input, shape index: {}]   ;;  %s1173_s4 = inlined_call_operand.vmem [shape: f32[16,128], index: 4, kind: input, shape index: {}]   ;;  %s1174_s5 = inlined_call_operand.hbm [shape: f32[2,128], index: 5, kind: output, shape index: {}]  }
   0x1   :  { %s11_s20 = sshll.u32 %s1169_s0, 4  ;;  %s12_s20 = int_to_ptr.vmem [resolvable:$true] %s11_s20 }
   0x2   :  { %14 = dma.vmem_to_smem %s12_s20, 16, %s988_s21, [#allocation2] }
   0x3   :  { %982 = dma.done.wait [#allocation2], 16 }
   0x4   :  { %983 = vsyncadd [#allocation2], 4294967280 }
   0x5   :  { %17 = sfence }
   0x6   :  { %18 = vsyncpa [#allocation5], 0 }
   0x7   :  { %19 = vsyncpa [#allocation6], 0  ;;  %s26_s24 = sshll.u32 %s1171_s2, 4  ;;  %s989_s25 = smov [#allocation4]   ;;  %s27_s24 = int_to_ptr.hbm [resolvable:$true] %s26_s24 }
   0x8   :  { %s28_s26 = sshll.u32 %s989_s25, 4  ;;  %s990_s27 = smov 320   ;;  %s29_s26 = int_to_ptr.vmem [resolvable:$true] %s28_s26 }
   0x9   :  { %s991_s28 = smov 20  }
   0xa   :  { %34 = dma.hbm_to_vmem [thread:$0]  %s27_s24, 1280, %s29_s26, [#allocation5], %s990_s27, %s990_s27, %s991_s28  }
   0xb   :  { %984 = dma.done.wait [#allocation5], 1280  }
   0xc   :  { %985 = vsyncadd [#allocation5], 4294966016  ;;  %vm48_vm0 = vcmask 261120   ;;  %v44_v0 = vld [vmem:[%s1170_s1] sm:$0xff]  ;;  %v45_v2 = vld [vmem:[%s1170_s1 + $0x8] sm:$0xff]  ;;  %v992_v4 = vmov 32.0  }
   0xd   :  { %v49_v1 = vsel %vm48_vm0, %v44_v0, 0.0  ;;  %v52_v3 = vsel %vm48_vm0, %v45_v2, 0.0  ;;  %886 = vrcp.f32 %v992_v4  ;;  %v773_v21 = vld [vmem:[#allocation4 + $0x28] sm:$0xf]  ;;  %v843_v22 = vld [vmem:[#allocation4 + $0x38] sm:$0xf0] }
   0xe   :  { %50 = vadd.xlane.f32.xlu0 %v49_v1  ;;  %v774_v23 = vor.u32 %v843_v22, %v773_v21  ;;  %v769_v24 = vld [vmem:[#allocation4] sm:$0xf]  ;;  %v842_v25 = vld [vmem:[#allocation4 + $0x10] sm:$0xf0]  ;;  %v876_v56 = vld [vmem:[%s1173_s4 + $0x6] ss:$0 sm:$0xff]  ;;  %v142_v1 = vlaneseq }
   0xf   :  { %v770_v27 = vor.u32 %v842_v25, %v769_v24  ;;  %v874_v46 = vld [vmem:[%s1173_s4] ss:$0 sm:$0xff]  ;;  %v875_v51 = vld [vmem:[%s1173_s4 + $0x1] ss:$0 sm:$0xff]  ;;  %s993_s11 = smov 112   ;;  %s994_s12 = smov 96  }
  0x10   :  { %134 = vmatpush.bf16.msra.mxu0 %v774_v23  ;;  %s995_s13 = smov 64   ;;  %s996_s14 = smov 80   ;;  %vm151_vm8 = vcmask 130048   ;;  %v997_v4 = vmov -1e+09   ;;  %vm176_vm10 = vcmask 64512  }
  0x11   :  { %s144_s15 = sld [smem:[#allocation3]]  ;;  %s998_s16 = smov 48  }
  0x12   :  { %s782_s17 = sld [smem:[#allocation3 + $0x1]]  ;;  %s999_s18 = smov 16  }
  0x13   :  { %v887_v5 = vpop.eup %886  ;;  %s757_s20 = sshll.u32 %s1174_s5, 4  ;;  %s758_s20 = int_to_ptr.hbm [resolvable:$true] %s757_s20 }
  0x14   :  { %v56_v6 = vmul.f32 32.0, %v887_v5  ;;  %vm60_vm1 = vweird.f32 %v887_v5  ;;  %135 = vmatpush.bf16.msra.mxu0 %v770_v27 }
  0x16   :  { %53 = vadd.xlane.f32.xlu0 %v52_v3  ;;  %v57_v7 = vsub.f32 1.0, %v56_v6 }
  0x17   :  { %v145_v3 = vstv %s144_s15 }
  0x18   :  { %v58_v8 = vmul.f32 %v887_v5, %v57_v7  ;;  %v285_v27 = vstv %s782_s17 }
  0x1a   :  { %v59_v9 = vadd.f32 %v887_v5, %v58_v8 }
  0x1c   :  { %v1045_v10 = vsel %vm60_vm1, %v887_v5, %v59_v9 }
  0x81   :  { %v51_v11 = vpop.xlane.xlu0 %50 }
  0x82   :  { %v62_v12 = vmul.f32 %v1045_v10, %v51_v11 }
  0x84   :  { %v64_v13 = vsub.f32 %v44_v0, %v62_v12 }
  0x86   :  { %v66_v14 = vmul.f32 %v64_v13, %v64_v13 }
  0x88   :  { %v68_v15 = vsel %vm48_vm0, %v66_v14, 0.0 }
  0x89   :  { %69 = vadd.xlane.f32.xlu1 %v68_v15  ;;  %v54_v16 = vpop.xlane.xlu0 %53 }
  0x8a   :  { %v63_v17 = vmul.f32 %v1045_v10, %v54_v16 }
  0x8c   :  { %v65_v18 = vsub.f32 %v45_v2, %v63_v17  ;;  %v143_v2 = vand.u32 127, %v142_v1 }
  0x8e   :  { %v67_v19 = vmul.f32 %v65_v18, %v65_v18  ;;  %vm146_vm9 = vcmp.lt.s32.totalorder %v143_v2, %v145_v3  ;;  %vm286_vm11 = vcmp.lt.s32.totalorder %v143_v2, %v285_v27 }
  0x8f   :  { %v147_v5 = vsel %vm146_vm9, 0.0, %v997_v4 }
  0x90   :  { %v71_v20 = vsel %vm48_vm0, %v67_v19, 0.0 }
  0x91   :  { %72 = vadd.xlane.f32.xlu1 %v71_v20 }
  0xfc   :  { %v70_v26 = vpop.xlane.xlu1 %69 }
  0xfd   :  { %v74_v28 = vmul.f32 %v70_v26, %v1045_v10 }
  0xff   :  { %v76_v29 = vadd.f32 1e-12, %v74_v28  ;;  %v287_v28 = vsel %vm286_vm11, 0.0, %v997_v4  ;;  %v791_v4 = vld [vmem:[#allocation4 + $0x4] sm:$0xf] }
 0x101   :  { %888 = vrsqrt.f32 %v76_v29  ;;  %vm84_vm3 = vweird.f32 %v76_v29 }
 0x104   :  { %v73_v30 = vpop.xlane.xlu1 %72 }
 0x105   :  { %v75_v31 = vmul.f32 %v73_v30, %v1045_v10 }
 0x107   :  { %v889_v32 = vpop.eup %888  ;;  %v77_v33 = vadd.f32 1e-12, %v75_v31 }
 0x108   :  { %v79_v34 = vmul.f32 %v889_v32, %v76_v29  ;;  %vm85_vm2 = vweird.f32 %v889_v32 }
 0x109   :  { %890 = vrsqrt.f32 %v77_v33  ;;  %vm86_vm4 = vmor %vm84_vm3, %vm85_vm2  ;;  %vm94_vm6 = vweird.f32 %v77_v33  ;;  %vm601_vm3 = vcmask 523264  }
 0x10a   :  { %v80_v35 = vmul.f32 %v889_v32, %v79_v34 }
 0x10c   :  { %v81_v36 = vmul.f32 0.5, %v80_v35 }
 0x10e   :  { %v82_v37 = vsub.f32 1.5, %v81_v36 }
 0x10f   :  { %v891_v38 = vpop.eup %890 }
 0x110   :  { %v83_v39 = vmul.f32 %v889_v32, %v82_v37  ;;  %v89_v40 = vmul.f32 %v891_v38, %v77_v33  ;;  %vm95_vm5 = vweird.f32 %v891_v38 }
 0x111   :  { %vm96_vm7 = vmor %vm94_vm6, %vm95_vm5 }
 0x112   :  { %v90_v41 = vmul.f32 %v891_v38, %v89_v40  ;;  %v87_v42 = vsel %vm86_vm4, %v889_v32, %v83_v39 }
 0x113   :  { %v98_v45 = vmul.f32 %v87_v42, %v64_v13 }
 0x114   :  { %v91_v43 = vmul.f32 0.5, %v90_v41 }
 0x115   :  { %v101_v50 = vmul.f32 %v874_v46, %v98_v45 }
 0x116   :  { %v92_v44 = vsub.f32 1.5, %v91_v43 }
 0x117   :  { %v1059_v53 = vadd.f32 %v875_v51, %v101_v50 }
 0x118   :  { %v93_v47 = vmul.f32 %v891_v38, %v92_v44 }
 0x11a   :  { %v97_v48 = vsel %vm96_vm7, %v891_v38, %v93_v47 }
 0x11b   :  { %v99_v49 = vmul.f32 %v97_v48, %v65_v18 }
 0x11d   :  { %v102_v52 = vmul.f32 %v874_v46, %v99_v49 }
 0x11f   :  { %v1061_v54 = vadd.f32 %v875_v51, %v102_v52 }
 0x121   :  { %v106_v55 = vpack.c.bf16 %v1061_v54, %v1059_v53 }
 0x123   :  { %775 = vmatmul.msk.bf16.vlgmr.msra.gmra.mxu0 %vm48_vm0, %v106_v55 }
 0x1a0   :  { %v137_v57 = vpop.f32.mrf.mxu0 }
 0x1a1   :  { %v138_v58 = vadd.f32 %v876_v56, %v137_v57 }
 0x1a3   :  { %214 = vrot.lane.b32.xlu0 %v138_v58, %s993_s11  ;;  %149 = vrot.lane.b32.xlu2 %v138_v58, %s994_s12 }
 0x1a8   :  { %v139_v59 = vpop.f32.mrf.mxu0 }
 0x1a9   :  { %v1071_v60 = vadd.f32 %v876_v56, %v139_v59 }
 0x1ab   :  { %188 = vrot.lane.b32.xlu0 %v138_v58, %s995_s13  ;;  %216 = vrot.lane.b32.xlu2 %v138_v58, %s996_s14 }
 0x1b3   :  { %354 = vrot.lane.b32.xlu0 %v1071_v60, %s996_s14 }
 0x1bb   :  { %352 = vrot.lane.b32.xlu0 %v1071_v60, %s993_s11 }
 0x1fd   :  { %v150_v61 = vpop.permute.xlu2 %149 }
 0x1fe   :  { %776 = vmatpush.xpose.msk.msra.mxu1 %vm151_vm8, %v150_v61 }
 0x201   :  { %777 = vmatmul.msk.f32.vlgmr.msra.gmra.mxu1 %vm151_vm8, %v138_v58 }
 0x205   :  { %v217_v62 = vpop.permute.xlu2 %216 }
 0x206   :  { %779 = vmatpush.xpose.msk.msrb.mxu0 %vm151_vm8, %v217_v62 }
 0x215   :  { %v215_v63 = vpop.permute.xlu0 %214 }
 0x216   :  { %780 = vmatmul.msk.f32.vlgmr.msrb.gmra.mxu0 %vm151_vm8, %v215_v63  ;;  %v795_v63 = vld [vmem:[#allocation4 + $0x2c] sm:$0xf] }
 0x21d   :  { %v189_v0 = vpop.permute.xlu0 %188 }
 0x21e   :  { %209 = vmatpush.msra.mxu2 %v189_v0  ;;  %v845_v0 = vld [vmem:[#allocation4 + $0x3c] sm:$0xf0] }
 0x21f   :  { %v796_v1 = vor.u32 %v845_v0, %v795_v63 }
 0x225   :  { %v355_v34 = vpop.permute.xlu0 %354 }
 0x22d   :  { %v353_v37 = vpop.permute.xlu0 %352 }
 0x27e   :  { %v173_v6 = vpop.f32.mrf.mxu1 }
 0x27f   :  { %v174_v7 = vadd.f32 %v173_v6, %v147_v5 }
 0x281   :  { %v177_v8 = vsel %vm176_vm10, %v174_v7, -inf }
 0x282   :  { %178 = vmax.xlane.f32.xlu1 %v177_v8 }
 0x293   :  { %v239_v9 = vpop.f32.mrf.mxu0 }
 0x294   :  { %v240_v11 = vadd.f32 %v239_v9, %v147_v5  ;;  %v844_v5 = vld [vmem:[#allocation4 + $0x14] sm:$0xf0] }
 0x295   :  { %v792_v6 = vor.u32 %v844_v5, %v791_v4  ;;  %v851_v5 = vld [vmem:[%s1172_s3 + $0x18] sm:$0xff] }
 0x296   :  { %v242_v12 = vsel %vm176_vm10, %v240_v11, -inf }
 0x297   :  { %243 = vmax.xlane.f32.xlu2 %v242_v12 }
 0x2af   :  { %289 = vrot.lane.b32.xlu2 %v1071_v60, %s994_s12 }
 0x2f5   :  { %v179_v13 = vpop.xlane.xlu1 %178 }
 0x2f6   :  { %v180_v14 = vsub.f32 %v174_v7, %v179_v13 }
 0x2f8   :  { %v181_v15 = vmul.f32 1.442695, %v180_v14 }
 0x2fa   :  { %892 = vpow2.f32 %v181_v15  ;;  %v877_v15 = vld [vmem:[%s1173_s4 + $0x7] ss:$0 sm:$0xff] }
 0x300   :  { %v893_v16 = vpop.eup %892 }
 0x301   :  { %v183_v17 = vsel %vm176_vm10, %v893_v16, 0.0 }
 0x302   :  { %184 = vadd.xlane.f32.xlu1 %v183_v17 }
 0x30a   :  { %v244_v18 = vpop.xlane.xlu2 %243 }
 0x30b   :  { %v245_v19 = vsub.f32 %v240_v11, %v244_v18 }
 0x30d   :  { %v246_v20 = vmul.f32 1.442695, %v245_v19 }
 0x30f   :  { %894 = vpow2.f32 %v246_v20 }
 0x312   :  { %v290_v21 = vpop.permute.xlu2 %289 }
 0x313   :  { %783 = vmatpush.xpose.msk.msrb.mxu1 %vm151_vm8, %v290_v21 }
 0x315   :  { %v895_v22 = vpop.eup %894 }
 0x316   :  { %784 = vmatmul.msk.f32.vlgmr.msrb.gmra.mxu1 %vm151_vm8, %v1071_v60  ;;  %v248_v23 = vsel %vm176_vm10, %v895_v22, 0.0 }
 0x317   :  { %249 = vadd.xlane.f32.xlu1 %v248_v23 }
 0x330   :  { %253 = vrot.lane.b32.xlu1 %v138_v58, %s998_s16 }
 0x375   :  { %v185_v24 = vpop.xlane.xlu1 %184 }
 0x376   :  { %896 = vrcp.f32 %v185_v24 }
 0x37c   :  { %v897_v25 = vpop.eup %896 }
 0x37d   :  { %v187_v26 = vmul.f32 %v897_v25, %v893_v16 }
 0x37f   :  { %778 = vmatmul.msk.f32.vlgmr.msra.gmra.mxu2 %vm176_vm10, %v187_v26 }
 0x38a   :  { %v250_v31 = vpop.xlane.xlu1 %249 }
 0x38b   :  { %898 = vrcp.f32 %v250_v31 }
 0x391   :  { %v899_v33 = vpop.eup %898 }
 0x392   :  { %v252_v36 = vmul.f32 %v899_v33, %v895_v22  ;;  %v847_v33 = vld [vmem:[#allocation4 + $0x40] sm:$0xf0] }
 0x393   :  { %v312_v29 = vpop.f32.mrf.mxu1 }
 0x394   :  { %v313_v30 = vadd.f32 %v312_v29, %v287_v28 }
 0x396   :  { %v315_v32 = vsel %vm176_vm10, %v313_v30, -inf }
 0x397   :  { %316 = vmax.xlane.f32.xlu1 %v315_v32 }
 0x3a2   :  { %v254_v35 = vpop.permute.xlu1 %253 }
 0x3a3   :  { %274 = vmatpush.msrb.mxu2 %v254_v35 }
 0x3a4   :  { %781 = vmatmul.msk.f32.vlgmr.msrb.gmra.mxu2 %vm176_vm10, %v252_v36 }
 0x3a5   :  { %786 = vmatpush.xpose.msk.msra.mxu2 %vm151_vm8, %v355_v34 }
 0x3a9   :  { %609 = vmatpush.bf16.msrb.mxu2 %v851_v5 }
 0x3ac   :  { %787 = vmatmul.msk.f32.vlgmr.msra.gmra.mxu2 %vm151_vm8, %v353_v37  ;;  %v800_v37 = vld [vmem:[#allocation4 + $0x8] sm:$0xf] }
 0x402   :  { %v211_v43 = vpop.f32.mrf.mxu2 }
 0x40a   :  { %v317_v38 = vpop.xlane.xlu1 %316 }
 0x40b   :  { %v318_v39 = vsub.f32 %v313_v30, %v317_v38  ;;  %v846_v38 = vld [vmem:[#allocation4 + $0x18] sm:$0xf0] }
 0x40d   :  { %v319_v40 = vmul.f32 1.442695, %v318_v39 }
 0x40f   :  { %900 = vpow2.f32 %v319_v40  ;;  %v801_v40 = vor.u32 %v846_v38, %v800_v37 }
 0x415   :  { %v901_v41 = vpop.eup %900 }
 0x416   :  { %v321_v42 = vsel %vm176_vm10, %v901_v41, 0.0 }
 0x417   :  { %322 = vadd.xlane.f32.xlu1 %v321_v42 }
 0x427   :  { %v276_v44 = vpop.f32.mrf.mxu2 }
 0x42f   :  { %v377_v45 = vpop.f32.mrf.mxu2 }
 0x430   :  { %v378_v46 = vadd.f32 %v377_v45, %v287_v28  ;;  %326 = vrot.lane.b32.xlu1 %v1071_v60, %s995_s13 }
 0x432   :  { %v380_v47 = vsel %vm176_vm10, %v378_v46, -inf }
 0x433   :  { %381 = vmax.xlane.f32.xlu0 %v380_v47 }
 0x447   :  { %391 = vrot.lane.b32.xlu0 %v1071_v60, %s998_s16  ;;  %s1000_s16 = smov [#allocation7]  }
 0x448   :  { %s755_s17 = sshll.u32 %s1000_s16, 4  ;;  %s756_s17 = int_to_ptr.vmem [resolvable:$true] %s755_s17 }
 0x48a   :  { %v323_v48 = vpop.xlane.xlu1 %322 }
 0x48b   :  { %902 = vrcp.f32 %v323_v48 }
 0x491   :  { %v903_v49 = vpop.eup %902 }
 0x492   :  { %v325_v51 = vmul.f32 %v903_v49, %v901_v41 }
 0x4a2   :  { %v327_v50 = vpop.permute.xlu1 %326 }
 0x4a3   :  { %347 = vmatpush.msra.mxu3 %v327_v50 }
 0x4a4   :  { %785 = vmatmul.msk.f32.vlgmr.msra.gmra.mxu3 %vm176_vm10, %v325_v51 }
 0x4a5   :  { %450 = vmatpush.bf16.msrb.mxu3 %v796_v1 }
 0x4a6   :  { %v382_v52 = vpop.xlane.xlu0 %381 }
 0x4a7   :  { %v383_v55 = vsub.f32 %v378_v46, %v382_v52 }
 0x4a9   :  { %v384_v56 = vmul.f32 1.442695, %v383_v55  ;;  %451 = vmatpush.bf16.msrb.mxu3 %v792_v6  ;;  %v850_v6 = vld [vmem:[%s1172_s3 + $0x10] sm:$0xff] }
 0x4aa   :  { %610 = vmatpush.bf16.msrb.mxu2 %v850_v6 }
 0x4ab   :  { %904 = vpow2.f32 %v384_v56 }
 0x4b1   :  { %v905_v57 = vpop.eup %904 }
 0x4b2   :  { %v386_v58 = vsel %vm176_vm10, %v905_v57, 0.0 }
 0x4b3   :  { %387 = vadd.xlane.f32.xlu2 %v386_v58  ;;  %v878_v58 = vld [vmem:[%s1173_s4 + $0x2] ss:$0 sm:$0xff] }
 0x4b9   :  { %v392_v59 = vpop.permute.xlu0 %391 }
 0x4ba   :  { %412 = vmatpush.msra.mxu1 %v392_v59 }
 0x526   :  { %v388_v61 = vpop.xlane.xlu2 %387 }
 0x527   :  { %906 = vrcp.f32 %v388_v61  ;;  %v349_v11 = vpop.f32.mrf.mxu3 }
 0x52d   :  { %v907_v60 = vpop.eup %906 }
 0x52e   :  { %v390_v62 = vmul.f32 %v907_v60, %v905_v57 }
 0x530   :  { %788 = vmatmul.msk.f32.vlgmr.msra.gmra.mxu1 %vm176_vm10, %v390_v62  ;;  %v879_v62 = vld [vmem:[%s1173_s4 + $0x3] ss:$0 sm:$0xff]  ;;  %vm676_vm10 = vcmask 1040384  }
 0x5ad   :  { %v414_v2 = vpop.f32.mrf.mxu1 }
 0x5ae   :  { %v869_v3 = vpack.i.bf16 %v414_v2, %v276_v44 }
 0x5b0   :  { %870 = vrot.lane.b32.xlu0 %v869_v3, %s999_s18 }
 0x622   :  { %v871_v7 = vpop.permute.xlu0 %870 }
 0x623   :  { %v873_v8 = vunpack.i.h.bf16 %v871_v7  ;;  %v872_v9 = vunpack.i.l.bf16 %v871_v7  ;;  %v849_v7 = vld [vmem:[%s1172_s3 + $0x8] sm:$0xff] }
 0x624   :  { %611 = vmatpush.bf16.msrb.mxu2 %v849_v7 }
 0x625   :  { %v421_v12 = vsel %vm151_vm8, %v349_v11, %v873_v8  ;;  %v283_v13 = vsel %vm151_vm8, %v211_v43, %v872_v9  ;;  %v848_v8 = vld [vmem:[%s1172_s3] sm:$0xff]  ;;  %v880_v9 = vld [vmem:[%s1173_s4 + $0x8] ss:$0 sm:$0xff] }
 0x626   :  { %v422_v14 = vpack.c.bf16 %v421_v12, %v283_v13 }
 0x628   :  { %797 = vmatmul.msk.bf16.vlgmr.msrb.gmra.mxu3 %vm48_vm0, %v422_v14  ;;  %612 = vmatpush.bf16.msrb.mxu2 %v848_v8 }
 0x6ab   :  { %v453_v16 = vpop.f32.mrf.mxu3 }
 0x6ac   :  { %v454_v17 = vadd.f32 %v877_v15, %v453_v16 }
 0x6ae   :  { %v458_v18 = vadd.f32 %v454_v17, %v1059_v53 }
 0x6b0   :  { %v462_v19 = vsel %vm48_vm0, %v458_v18, 0.0 }
 0x6b1   :  { %463 = vadd.xlane.f32.xlu2 %v462_v19 }
 0x6b3   :  { %v455_v20 = vpop.f32.mrf.mxu3 }
 0x6b4   :  { %v456_v21 = vadd.f32 %v877_v15, %v455_v20 }
 0x6b6   :  { %v459_v22 = vadd.f32 %v456_v21, %v1061_v54  ;;  %v804_v54 = vld [vmem:[#allocation4 + $0x30] sm:$0xf] }
 0x6b7   :  { %v805_v34 = vor.u32 %v847_v33, %v804_v54  ;;  %v881_v54 = vld [vmem:[%s1173_s4 + $0x9] ss:$0 sm:$0xff] }
 0x6b8   :  { %v465_v23 = vsel %vm48_vm0, %v459_v22, 0.0 }
 0x6b9   :  { %466 = vadd.xlane.f32.xlu0 %v465_v23  ;;  %540 = vmatpush.bf16.msra.mxu0 %v805_v34 }
 0x6bd   :  { %541 = vmatpush.bf16.msra.mxu0 %v801_v40 }
 0x724   :  { %v464_v24 = vpop.xlane.xlu2 %463 }
 0x725   :  { %v468_v25 = vmul.f32 %v464_v24, %v1045_v10 }
 0x727   :  { %v470_v26 = vsub.f32 %v458_v18, %v468_v25 }
 0x729   :  { %v472_v27 = vmul.f32 %v470_v26, %v470_v26 }
 0x72b   :  { %v474_v28 = vsel %vm48_vm0, %v472_v27, 0.0 }
 0x72c   :  { %v467_v29 = vpop.xlane.xlu0 %466  ;;  %475 = vadd.xlane.f32.xlu2 %v474_v28 }
 0x72d   :  { %v469_v53 = vmul.f32 %v467_v29, %v1045_v10 }
 0x72f   :  { %v471_v30 = vsub.f32 %v459_v22, %v469_v53 }
 0x731   :  { %v473_v31 = vmul.f32 %v471_v30, %v471_v30 }
 0x733   :  { %v477_v32 = vsel %vm48_vm0, %v473_v31, 0.0 }
 0x734   :  { %478 = vadd.xlane.f32.xlu2 %v477_v32 }
 0x79f   :  { %v476_v35 = vpop.xlane.xlu2 %475 }
 0x7a0   :  { %v480_v36 = vmul.f32 %v476_v35, %v1045_v10 }
 0x7a2   :  { %v482_v39 = vadd.f32 1e-12, %v480_v36 }
 0x7a4   :  { %908 = vrsqrt.f32 %v482_v39  ;;  %vm490_vm13 = vweird.f32 %v482_v39 }
 0x7a7   :  { %v479_v41 = vpop.xlane.xlu2 %478 }
 0x7a8   :  { %v481_v42 = vmul.f32 %v479_v41, %v1045_v10 }
 0x7aa   :  { %v909_v43 = vpop.eup %908  ;;  %v483_v44 = vadd.f32 1e-12, %v481_v42 }
 0x7ab   :  { %v485_v45 = vmul.f32 %v909_v43, %v482_v39  ;;  %vm491_vm12 = vweird.f32 %v909_v43 }
 0x7ac   :  { %910 = vrsqrt.f32 %v483_v44  ;;  %vm492_vm14 = vmor %vm490_vm13, %vm491_vm12  ;;  %vm500_vm1 = vweird.f32 %v483_v44 }
 0x7ad   :  { %v486_v46 = vmul.f32 %v909_v43, %v485_v45 }
 0x7af   :  { %v487_v47 = vmul.f32 0.5, %v486_v46 }
 0x7b1   :  { %v488_v48 = vsub.f32 1.5, %v487_v47 }
 0x7b2   :  { %v911_v49 = vpop.eup %910 }
 0x7b3   :  { %v489_v50 = vmul.f32 %v909_v43, %v488_v48  ;;  %v495_v51 = vmul.f32 %v911_v49, %v483_v44  ;;  %vm501_vm15 = vweird.f32 %v911_v49 }
 0x7b4   :  { %vm502_vm2 = vmor %vm500_vm1, %vm501_vm15 }
 0x7b5   :  { %v496_v52 = vmul.f32 %v911_v49, %v495_v51  ;;  %v493_v55 = vsel %vm492_vm14, %v909_v43, %v489_v50  ;;  %v830_v51 = vld [vmem:[#allocation4 + $0x34] sm:$0xf] }
 0x7b6   :  { %v504_v59 = vmul.f32 %v493_v55, %v470_v26 }
 0x7b7   :  { %v497_v56 = vmul.f32 0.5, %v496_v52  ;;  %v853_v52 = vld [vmem:[#allocation4 + $0x44] sm:$0xf0] }
 0x7b8   :  { %v507_v63 = vmul.f32 %v878_v58, %v504_v59  ;;  %v826_v59 = vld [vmem:[#allocation4 + $0xc] sm:$0xf] }
 0x7b9   :  { %v498_v57 = vsub.f32 1.5, %v497_v56  ;;  %v831_v56 = vor.u32 %v853_v52, %v830_v51 }
 0x7ba   :  { %v510_v2 = vadd.f32 %v879_v62, %v507_v63 }
 0x7bb   :  { %v499_v61 = vmul.f32 %v911_v49, %v498_v57  ;;  %706 = vmatpush.bf16.msrb.mxu1 %v831_v56 }
 0x7bd   :  { %v503_v60 = vsel %vm502_vm2, %v911_v49, %v499_v61  ;;  %v852_v61 = vld [vmem:[#allocation4 + $0x1c] sm:$0xf0] }
 0x7be   :  { %v505_v0 = vmul.f32 %v503_v60, %v471_v30  ;;  %v827_v60 = vor.u32 %v852_v61, %v826_v59 }
 0x7c0   :  { %v508_v1 = vmul.f32 %v878_v58, %v505_v0  ;;  %707 = vmatpush.bf16.msrb.mxu1 %v827_v60 }
 0x7c2   :  { %v511_v3 = vadd.f32 %v879_v62, %v508_v1 }
 0x7c4   :  { %v512_v4 = vpack.c.bf16 %v511_v3, %v510_v2 }
 0x7c6   :  { %806 = vmatmul.msk.bf16.vlgmr.msra.gmra.mxu0 %vm48_vm0, %v512_v4 }
 0x843   :  { %v543_v11 = vpop.f32.mrf.mxu0 }
 0x844   :  { %v544_v12 = vadd.f32 %v880_v9, %v543_v11 }
 0x846   :  { %v550_v13 = vmul.f32 0.044715, %v544_v12  ;;  %v548_v28 = vmul.f32 0.5, %v544_v12 }
 0x848   :  { %v552_v14 = vmul.f32 %v550_v13, %v544_v12 }
 0x84a   :  { %v554_v15 = vmul.f32 %v552_v14, %v544_v12 }
 0x84b   :  { %v545_v16 = vpop.f32.mrf.mxu0 }
 0x84c   :  { %v556_v17 = vadd.f32 %v554_v15, %v544_v12  ;;  %v546_v18 = vadd.f32 %v880_v9, %v545_v16  ;;  %v882_v12 = vld [vmem:[%s1173_s4 + $0x4] ss:$0 sm:$0xff]  ;;  %v883_v15 = vld [vmem:[%s1173_s4 + $0x5] ss:$0 sm:$0xff] }
 0x84e   :  { %v551_v19 = vmul.f32 0.044715, %v546_v18  ;;  %v558_v20 = vmul.f32 0.7978846, %v556_v17  ;;  %v549_v29 = vmul.f32 0.5, %v546_v18 }
 0x850   :  { %v553_v21 = vmul.f32 %v551_v19, %v546_v18  ;;  %912 = vtanh.f32 %v558_v20 }
 0x852   :  { %v555_v22 = vmul.f32 %v553_v21, %v546_v18 }
 0x854   :  { %v557_v23 = vadd.f32 %v555_v22, %v546_v18 }
 0x856   :  { %v559_v24 = vmul.f32 0.7978846, %v557_v23  ;;  %v913_v25 = vpop.eup %912 }
 0x857   :  { %v562_v26 = vadd.f32 1.0, %v913_v25 }
 0x858   :  { %914 = vtanh.f32 %v559_v24 }
 0x859   :  { %v564_v30 = vmul.f32 %v562_v26, %v548_v28  ;;  %v839_v26 = vld [vmem:[#allocation4 + $0x38] sm:$0xf] }
 0x85e   :  { %v915_v27 = vpop.eup %914 }
 0x85f   :  { %v563_v53 = vadd.f32 1.0, %v915_v27  ;;  %v855_v27 = vld [vmem:[#allocation4 + $0x48] sm:$0xf0] }
 0x860   :  { %v840_v28 = vor.u32 %v855_v27, %v839_v26 }
 0x861   :  { %v565_v31 = vmul.f32 %v563_v53, %v549_v29  ;;  %v835_v29 = vld [vmem:[#allocation4 + $0x10] sm:$0xf]  ;;  %v854_v53 = vld [vmem:[#allocation4 + $0x20] sm:$0xf0] }
 0x862   :  { %742 = vmatpush.bf16.msra.mxu3 %v840_v28 }
 0x863   :  { %v566_v32 = vpack.c.bf16 %v565_v31, %v564_v30  ;;  %v836_v30 = vor.u32 %v854_v53, %v835_v29  ;;  %v884_v31 = vld [vmem:[%s1173_s4 + $0xa] ss:$0 sm:$0xff] }
 0x865   :  { %823 = vmatmul.msk.bf16.vlgmr.msrb.gmra.mxu2 %vm601_vm3, %v566_v32 }
 0x866   :  { %743 = vmatpush.bf16.msra.mxu3 %v836_v30 }
 0x8e8   :  { %v614_v33 = vpop.f32.mrf.mxu2 }
 0x8e9   :  { %v615_v34 = vadd.f32 %v881_v54, %v614_v33 }
 0x8eb   :  { %v619_v35 = vadd.f32 %v615_v34, %v510_v2 }
 0x8ed   :  { %v623_v36 = vsel %vm48_vm0, %v619_v35, 0.0 }
 0x8ee   :  { %624 = vadd.xlane.f32.xlu2 %v623_v36  ;;  %v885_v36 = vld [vmem:[%s1173_s4 + $0xb] ss:$0 sm:$0xff] }
 0x8f0   :  { %v616_v37 = vpop.f32.mrf.mxu2 }
 0x8f1   :  { %v617_v38 = vadd.f32 %v881_v54, %v616_v37 }
 0x8f3   :  { %v620_v39 = vadd.f32 %v617_v38, %v511_v3 }
 0x8f5   :  { %v626_v40 = vsel %vm48_vm0, %v620_v39, 0.0 }
 0x8f6   :  { %627 = vadd.xlane.f32.xlu1 %v626_v40 }
 0x961   :  { %v625_v41 = vpop.xlane.xlu2 %624 }
 0x962   :  { %v629_v44 = vmul.f32 %v625_v41, %v1045_v10 }
 0x964   :  { %v631_v47 = vsub.f32 %v619_v35, %v629_v44 }
 0x966   :  { %v633_v49 = vmul.f32 %v631_v47, %v631_v47 }
 0x968   :  { %v635_v50 = vsel %vm48_vm0, %v633_v49, 0.0 }
 0x969   :  { %v628_v42 = vpop.xlane.xlu1 %627 }
 0x96a   :  { %v630_v43 = vmul.f32 %v628_v42, %v1045_v10 }
 0x96c   :  { %v632_v45 = vsub.f32 %v620_v39, %v630_v43 }
 0x96e   :  { %v634_v46 = vmul.f32 %v632_v45, %v632_v45 }
 0x970   :  { %v638_v48 = vsel %vm48_vm0, %v634_v46, 0.0 }
 0x971   :  { %639 = vadd.xlane.f32.xlu2 %v638_v48 }
 0x979   :  { %636 = vadd.xlane.f32.xlu2 %v635_v50 }
 0x9e4   :  { %v640_v55 = vpop.xlane.xlu2 %639 }
 0x9e5   :  { %v642_v57 = vmul.f32 %v640_v55, %v1045_v10 }
 0x9e7   :  { %v644_v58 = vadd.f32 1e-12, %v642_v57 }
 0x9e9   :  { %916 = vrsqrt.f32 %v644_v58  ;;  %vm661_vm5 = vweird.f32 %v644_v58 }
 0x9ec   :  { %v637_v62 = vpop.xlane.xlu2 %636 }
 0x9ed   :  { %v641_v63 = vmul.f32 %v637_v62, %v1045_v10 }
 0x9ef   :  { %v917_v0 = vpop.eup %916  ;;  %v643_v1 = vadd.f32 1e-12, %v641_v63 }
 0x9f0   :  { %v656_v2 = vmul.f32 %v917_v0, %v644_v58  ;;  %vm662_vm4 = vweird.f32 %v917_v0 }
 0x9f1   :  { %918 = vrsqrt.f32 %v643_v1  ;;  %vm663_vm6 = vmor %vm661_vm5, %vm662_vm4  ;;  %vm651_vm8 = vweird.f32 %v643_v1 }
 0x9f2   :  { %v657_v3 = vmul.f32 %v917_v0, %v656_v2 }
 0x9f4   :  { %v658_v4 = vmul.f32 0.5, %v657_v3 }
 0x9f6   :  { %v659_v5 = vsub.f32 1.5, %v658_v4 }
 0x9f7   :  { %v919_v6 = vpop.eup %918 }
 0x9f8   :  { %v660_v7 = vmul.f32 %v917_v0, %v659_v5  ;;  %v646_v8 = vmul.f32 %v919_v6, %v643_v1  ;;  %vm652_vm7 = vweird.f32 %v919_v6 }
 0x9f9   :  { %vm653_vm9 = vmor %vm651_vm8, %vm652_vm7 }
 0x9fa   :  { %v664_v9 = vsel %vm663_vm6, %v917_v0, %v660_v7  ;;  %v647_v11 = vmul.f32 %v919_v6, %v646_v8 }
 0x9fb   :  { %v666_v10 = vmul.f32 %v664_v9, %v632_v45 }
 0x9fc   :  { %v648_v13 = vmul.f32 0.5, %v647_v11 }
 0x9fd   :  { %v669_v16 = vmul.f32 %v882_v12, %v666_v10 }
 0x9fe   :  { %v649_v14 = vsub.f32 1.5, %v648_v13 }
 0x9ff   :  { %v672_v19 = vadd.f32 %v883_v15, %v669_v16 }
 0xa00   :  { %v650_v17 = vmul.f32 %v919_v6, %v649_v14 }
 0xa01   :  { %v674_v22 = vrot.slane %v672_v19, 7 }
 0xa02   :  { %v654_v18 = vsel %vm653_vm9, %v919_v6, %v650_v17 }
 0xa03   :  { %v665_v20 = vmul.f32 %v654_v18, %v631_v47 }
 0xa05   :  { %v668_v21 = vmul.f32 %v882_v12, %v665_v20 }
 0xa07   :  { %v671_v23 = vadd.f32 %v883_v15, %v668_v21 }
 0xa09   :  { %v677_v24 = vsel %vm676_vm10, %v671_v23, %v674_v22 }
 0xa0a   :  { %v678_v25 = vpack.c.bf16 %v677_v24, %v677_v24 }
 0xa0c   :  { %832 = vmatmul.msk.bf16.vlgmr.msrb.gmra.mxu1 %vm48_vm0, %v678_v25 }
 0xa89   :  { %v709_v32 = vpop.f32.mrf.mxu1 }
 0xa8a   :  { %v710_v54 = vadd.f32 %v884_v31, %v709_v32 }
 0xa8c   :  { %920 = vtanh.f32 %v710_v54 }
 0xa91   :  { %v711_v33 = vpop.f32.mrf.mxu1 }
 0xa92   :  { %v921_v34 = vpop.eup %920 }
 0xa93   :  { %v714_v35 = vpack.c.bf16 %v921_v34, %v921_v34 }
 0xa95   :  { %841 = vmatmul.msk.bf16.vlgmr.msra.gmra.mxu3 %vm48_vm0, %v714_v35 }
 0xb18   :  { %v745_v37 = vpop.f32.mrf.mxu3 }
 0xb19   :  { %v746_v38 = vadd.f32 %v885_v36, %v745_v37 }
 0xb1b   :  { %749 = vst [vmem:[#allocation7] sm:$0x3] %v746_v38 }
 0xb1c   :  { %760 = dma.vmem_to_hbm [thread:$0]  %s756_s17, 32, %s758_s20, [#allocation6]  }
 0xb20   :  { %v747_v39 = vpop.f32.mrf.mxu3 }
 0xb21   :  { %986 = dma.done.wait [#allocation6], 32  }
 0xb22   :  { %987 = vsyncadd [#allocation6], 4294967264 }
 0xb23   :  { %765 = vsyncpa [#allocation5], 1 }
 0xb24   :  { %766 = vsyncpa [#allocation6], 1 }

</bundles_post_ra>
